<compile_context>
chip_gen: v5e
topology: v5e:2x2
jax: 0.10.0
libtpu: 0.0.40
codegen_flags: <defaults>
</compile_context>

<pallas_src>
import jax
import jax.numpy as jnp
from jax import lax
from jax.experimental import pallas as pl
from jax.experimental.pallas import tpu as pltpu


# ----------------------------------------------------------------------------
# Pallas kernels
# ----------------------------------------------------------------------------
def mlp1_kernel(x_ref, w1_ref, b1_ref, y_ref):
    """y[:, :, tile] = W1 @ x[:, :, tile] + b1   (channels-first layout).

    x_ref: (1, C, T)   w1_ref: (3C, C)   b1_ref: (3C, 1)   y_ref: (1, 3C, T)
    """
    y = jnp.dot(w1_ref[...], x_ref[0], preferred_element_type=jnp.float32)
    y_ref[0] = (y + b1_ref[...]).astype(y_ref.dtype)


def combine_proj_kernel(y1_ref, y2_ref, y3_ref, attn_ref, w2_ref, b2_ref, o_ref):
    """out[:, :, tile] = W2 @ (sum_k attn_k * y_k[:, :, tile]) + b2.

    y*_ref: (1, C, T)   attn_ref: (1, C, 3)   w2_ref: (C, C)   b2_ref: (C, 1)
    o_ref : (1, C, T)
    """
    att = attn_ref[0]                                       # (C, 3)
    combined = (y1_ref[0] * att[:, 0:1]
                + y2_ref[0] * att[:, 1:2]
                + y3_ref[0] * att[:, 2:3])                  # (C, T)
    out = jnp.dot(w2_ref[...], combined, preferred_element_type=jnp.float32)
    o_ref[0] = (out + b2_ref[...]).astype(o_ref.dtype)


# ----------------------------------------------------------------------------
# Spatial-shift glue (functional equivalent of the in-place PyTorch shifts)
# ----------------------------------------------------------------------------
def _edge_shift(v, axis, fwd):
    n = v.shape[axis]
    if fwd:   # out[1:] = in[:-1], out[0] = in[0]
        parts = [lax.slice_in_dim(v, 0, 1, axis=axis),
                 lax.slice_in_dim(v, 0, n - 1, axis=axis)]
    else:     # out[:-1] = in[1:], out[-1] = in[-1]
        parts = [lax.slice_in_dim(v, 1, n, axis=axis),
                 lax.slice_in_dim(v, n - 1, n, axis=axis)]
    return jnp.concatenate(parts, axis=axis)


def _spatial_shift(v, c_axis, moves):
    c = v.shape[c_axis]
    q = c // 4
    outs = [_edge_shift(lax.slice_in_dim(v, g * q, (g + 1) * q, axis=c_axis),
                        ax, fwd)
            for g, (ax, fwd) in enumerate(moves)]
    return jnp.concatenate(outs, axis=c_axis)


def _shift1_moves(w_axis, h_axis):
    return [(w_axis, True), (w_axis, False), (h_axis, True), (h_axis, False)]


def _shift2_moves(w_axis, h_axis):
    return [(h_axis, True), (h_axis, False), (w_axis, True), (w_axis, False)]


# ----------------------------------------------------------------------------
# Wrapper
# ----------------------------------------------------------------------------
def _tile_and_pad(wh):
    """Pick a 128-aligned lane tile and the padded spatial extent."""
    tile = 128 if wh <= 256 else 512
    wh_pad = ((wh + tile - 1) // tile) * tile
    return tile, wh_pad


def _pad_lanes(a, n_pad):
    if a.shape[-1] == n_pad:
        return a
    cfg = [(0, 0)] * (a.ndim - 1) + [(0, n_pad - a.shape[-1])]
    return jnp.pad(a, cfg)


def s2_attention(x, params):
    """x: (B, C, W, H) float32 -> (B, C, W, H)."""
    B, C, W, H = x.shape
    C3 = 3 * C
    WH = W * H
    T, WHp = _tile_and_pad(WH)
    n_t = WHp // T

    w1 = params["w1"]                     # (3C, C)  torch (out, in) layout
    b1 = params["b1"].reshape(C3, 1)
    w2 = params["w2"]                     # (C, C)
    b2 = params["b2"].reshape(C, 1)
    wsa1 = params["wsa1"]                 # (C, C)
    wsa2 = params["wsa2"]                 # (3C, C)

    x_cf = _pad_lanes(x.reshape(B, C, WH).astype(jnp.float32), WHp)

    # ---- Pallas kernel A: mlp1, channels-first, lane-dense over W*H ----
    y = pl.pallas_call(
        mlp1_kernel,
        out_shape=jax.ShapeDtypeStruct((B, C3, WHp), jnp.float32),
        grid_spec=pltpu.PrefetchScalarGridSpec(
            num_scalar_prefetch=0,
            grid=(B, n_t),
            in_specs=[
                pl.BlockSpec((1, C, T), lambda b, t: (b, 0, t)),
                pl.BlockSpec((C3, C), lambda b, t: (0, 0)),
                pl.BlockSpec((C3, 1), lambda b, t: (0, 0)),
            ],
            out_specs=pl.BlockSpec((1, C3, T), lambda b, t: (b, 0, t)),
        ),
        compiler_params=pltpu.CompilerParams(
            dimension_semantics=("parallel", "parallel")),
    )(x_cf, w1, b1)

    y = y[:, :, :WH].reshape(B, C3, W, H)

    # ---- spatial shifts: pure data movement, XLA slicing ----
    y1 = _spatial_shift(y[:, :C], c_axis=1, moves=_shift1_moves(2, 3))
    y2 = _spatial_shift(y[:, C:2 * C], c_axis=1, moves=_shift2_moves(2, 3))
    y3 = y[:, 2 * C:]

    # ---- split-attention gate: tiny (B, C) math, all batches at once ----
    a = y1.sum(axis=(2, 3)) + y2.sum(axis=(2, 3)) + y3.sum(axis=(2, 3))   # (B, C)
    h = jax.nn.gelu(a @ wsa1.T, approximate=False)                        # (B, C)
    hat = (h @ wsa2.T).reshape(B, 3, C)                                   # (B, 3, C)
    attn = jax.nn.softmax(hat, axis=1)                                    # (B, 3, C)
    attn_t = jnp.transpose(attn, (0, 2, 1))                               # (B, C, 3)

    y1f = _pad_lanes(y1.reshape(B, C, WH), WHp)
    y2f = _pad_lanes(y2.reshape(B, C, WH), WHp)
    y3f = _pad_lanes(y3.reshape(B, C, WH), WHp)

    # ---- Pallas kernel B: fused attention-weighted combine + mlp2 ----
    out = pl.pallas_call(
        combine_proj_kernel,
        out_shape=jax.ShapeDtypeStruct((B, C, WHp), jnp.float32),
        grid_spec=pltpu.PrefetchScalarGridSpec(
            num_scalar_prefetch=0,
            grid=(B, n_t),
            in_specs=[
                pl.BlockSpec((1, C, T), lambda b, t: (b, 0, t)),
                pl.BlockSpec((1, C, T), lambda b, t: (b, 0, t)),
                pl.BlockSpec((1, C, T), lambda b, t: (b, 0, t)),
                pl.BlockSpec((1, C, 3), lambda b, t: (b, 0, 0)),
                pl.BlockSpec((C, C), lambda b, t: (0, 0)),
                pl.BlockSpec((C, 1), lambda b, t: (0, 0)),
            ],
            out_specs=pl.BlockSpec((1, C, T), lambda b, t: (b, 0, t)),
        ),
        compiler_params=pltpu.CompilerParams(
            dimension_semantics=("parallel", "parallel")),
    )(y1f, y2f, y3f, attn_t, w2, b2)

    return out[:, :, :WH].reshape(B, C, W, H)


# ----------------------------------------------------------------------------
# Pure-JAX reference (channels-last, mirrors the PyTorch forward)
# ----------------------------------------------------------------------------
def reference_s2attention(x, params):
    B, C, W, H = x.shape
    hp = lax.Precision.HIGHEST
    xc = jnp.transpose(x, (0, 2, 3, 1))                                    # (B, W, H, C)
    y = jnp.einsum("bwhc,oc->bwho", xc, params["w1"], precision=hp) + params["b1"]
    x1 = _spatial_shift(y[..., :C], c_axis=3, moves=_shift1_moves(1, 2))
    x2 = _spatial_shift(y[..., C:2 * C], c_axis=3, moves=_shift2_moves(1, 2))
    x3 = y[..., 2 * C:]
    x_all = jnp.stack([x1, x2, x3], axis=1).reshape(B, 3, W * H, C)
    a = x_all.sum(axis=(1, 2))                                             # (B, C)
    h = jax.nn.gelu(a @ params["wsa1"].T, approximate=False)
    hat = (h @ params["wsa2"].T).reshape(B, 3, C)
    attn = jax.nn.softmax(hat, axis=1)
    out = (attn[:, :, None, :] * x_all).sum(axis=1)                        # (B, WH, C)
    out = jnp.einsum("bnc,oc->bno", out, params["w2"], precision=hp) + params["b2"]
    return jnp.transpose(out.reshape(B, W, H, C), (0, 3, 1, 2))


if __name__ == "__main__":
    key = jax.random.PRNGKey(0)
    B, C, W, H = 2, 64, 16, 16
    C3 = 3 * C

    kx, k1, kb1, k2, kb2, ks1, ks2 = jax.random.split(key, 7)
    x = jax.random.normal(kx, (B, C, W, H), dtype=jnp.float32)

    # Weights in PyTorch nn.Linear layout: weight = (out_features, in_features).
    params = {
        "w1":   jax.random.normal(k1, (C3, C), jnp.float32) / jnp.sqrt(C * 1.0),
        "b1":   jax.random.normal(kb1, (C3,), jnp.float32) * 0.02,
        "w2":   jax.random.normal(k2, (C, C), jnp.float32) / jnp.sqrt(C * 1.0),
        "b2":   jax.random.normal(kb2, (C,), jnp.float32) * 0.02,
        # split-attention MLPs (bias=False); scaled so softmax logits stay O(1)
        "wsa1": jax.random.normal(ks1, (C, C), jnp.float32)
                / (jnp.sqrt(C * 1.0) * jnp.sqrt(3.0 * W * H)),
        "wsa2": jax.random.normal(ks2, (C3, C), jnp.float32) / jnp.sqrt(C * 1.0),
    }

    out = jax.jit(s2_attention)(x, params)
    out = jax.block_until_ready(out)

    ref = reference_s2attention(x, params)
    assert out.shape == (B, C, W, H)
    assert jnp.allclose(out, ref, atol=5e-3, rtol=5e-3), (
        "mismatch vs reference: max |diff| = %g"
        % float(jnp.max(jnp.abs(out - ref))))

    print("KERNEL_OK")
</pallas_src>

<mosaic_0001>
module attributes {stable_mosaic.version = 11 : i64} {
  func.func @mlp1_kernel(%arg0: i32, %arg1: i32, %arg2: memref<1x64x128xf32, #tpu.memory_space<vmem>>, %arg3: memref<192x64xf32, #tpu.memory_space<vmem>>, %arg4: memref<192x1xf32, #tpu.memory_space<vmem>>, %arg5: memref<1x192x128xf32, #tpu.memory_space<vmem>>) attributes {dimension_semantics = [#tpu.dimension_semantics<parallel>, #tpu.dimension_semantics<parallel>], iteration_bounds = array<i64: 2, 2>, scalar_prefetch = 0 : i64, scratch_operands = 0 : i64, tpu.core_type = #tpu.core_type<tc>, window_params = [{transform_indices = @transform_0, window_bounds = array<i64: 1, 64, 128>}, {pipeline_mode = #tpu.pipeline_mode<synchronous>, transform_indices = @transform_1, window_bounds = array<i64: 192, 64>}, {pipeline_mode = #tpu.pipeline_mode<synchronous>, transform_indices = @transform_2, window_bounds = array<i64: 192, 1>}, {transform_indices = @transform_3, window_bounds = array<i64: 1, 192, 128>}]} {
    %c0 = arith.constant 0 : index
    %c0_0 = arith.constant 0 : index
    %0 = vector.load %arg3[%c0, %c0_0] : memref<192x64xf32, #tpu.memory_space<vmem>>, vector<192x64xf32>
    %c0_1 = arith.constant 0 : index
    %c0_2 = arith.constant 0 : index
    %c0_3 = arith.constant 0 : index
    %1 = vector.load %arg2[%c0_1, %c0_2, %c0_3] : memref<1x64x128xf32, #tpu.memory_space<vmem>>, vector<1x64x128xf32>
    %2 = vector.shape_cast %1 : vector<1x64x128xf32> to vector<64x128xf32>
    %cst = arith.constant dense<0.000000e+00> : vector<192x128xf32>
    %3 = tpu.matmul %0, %2, %cst {dimension_numbers = #tpu.dot_dimension_numbers<[1], [0], [0], [1], [0, 0, 1, 1], [], []>} : vector<192x64xf32>, vector<64x128xf32>, vector<192x128xf32> -> vector<192x128xf32>
    %c0_4 = arith.constant 0 : index
    %c0_5 = arith.constant 0 : index
    %4 = vector.load %arg4[%c0_4, %c0_5] : memref<192x1xf32, #tpu.memory_space<vmem>>, vector<192x1xf32>
    %5 = vector.broadcast %4 : vector<192x1xf32> to vector<192x128xf32>
    %6 = arith.addf %3, %5 : vector<192x128xf32>
    %c0_6 = arith.constant 0 : index
    %c0_7 = arith.constant 0 : index
    %c0_8 = arith.constant 0 : index
    %7 = vector.load %arg5[%c0_6, %c0_7, %c0_8] : memref<1x192x128xf32, #tpu.memory_space<vmem>>, vector<1x192x128xf32>
    %8 = vector.shape_cast %7 : vector<1x192x128xf32> to vector<192x128xf32>
    %9 = vector.shape_cast %6 : vector<192x128xf32> to vector<1x192x128xf32>
    tpu.vector_store %arg5[%c0_6, %c0_7, %c0_8], %9 {strides = array<i32>} : memref<1x192x128xf32, #tpu.memory_space<vmem>>, vector<1x192x128xf32>,
    return
  }
  func.func @transform_0(%arg0: i32, %arg1: i32) -> (i32, i32, i32) {
    %c0_i32 = arith.constant 0 : i32
    %c0_i32_0 = arith.constant 0 : i32
    return %arg0, %c0_i32, %arg1 : i32, i32, i32
  }
  func.func @transform_1(%arg0: i32, %arg1: i32) -> (i32, i32) {
    %c0_i32 = arith.constant 0 : i32
    %c0_i32_0 = arith.constant 0 : i32
    %c0_i32_1 = arith.constant 0 : i32
    return %c0_i32, %c0_i32_0 : i32, i32
  }
  func.func @transform_2(%arg0: i32, %arg1: i32) -> (i32, i32) {
    %c0_i32 = arith.constant 0 : i32
    %c0_i32_0 = arith.constant 0 : i32
    %c0_i32_1 = arith.constant 0 : i32
    return %c0_i32, %c0_i32_0 : i32, i32
  }
  func.func @transform_3(%arg0: i32, %arg1: i32) -> (i32, i32, i32) {
    %c0_i32 = arith.constant 0 : i32
    %c0_i32_0 = arith.constant 0 : i32
    return %arg0, %c0_i32, %arg1 : i32, i32, i32
  }
}

module attributes {stable_mosaic.version = 11 : i64} {
  func.func @combine_proj_kernel(%arg0: i32, %arg1: i32, %arg2: memref<1x64x128xf32, #tpu.memory_space<vmem>>, %arg3: memref<1x64x128xf32, #tpu.memory_space<vmem>>, %arg4: memref<1x64x128xf32, #tpu.memory_space<vmem>>, %arg5: memref<1x64x3xf32, #tpu.memory_space<vmem>>, %arg6: memref<64x64xf32, #tpu.memory_space<vmem>>, %arg7: memref<64x1xf32, #tpu.memory_space<vmem>>, %arg8: memref<1x64x128xf32, #tpu.memory_space<vmem>>) attributes {dimension_semantics = [#tpu.dimension_semantics<parallel>, #tpu.dimension_semantics<parallel>], iteration_bounds = array<i64: 2, 2>, scalar_prefetch = 0 : i64, scratch_operands = 0 : i64, tpu.core_type = #tpu.core_type<tc>, window_params = [{transform_indices = @transform_0, window_bounds = array<i64: 1, 64, 128>}, {transform_indices = @transform_1, window_bounds = array<i64: 1, 64, 128>}, {transform_indices = @transform_2, window_bounds = array<i64: 1, 64, 128>}, {transform_indices = @transform_3, window_bounds = array<i64: 1, 64, 3>}, {pipeline_mode = #tpu.pipeline_mode<synchronous>, transform_indices = @transform_4, window_bounds = array<i64: 64, 64>}, {pipeline_mode = #tpu.pipeline_mode<synchronous>, transform_indices = @transform_5, window_bounds = array<i64: 64, 1>}, {transform_indices = @transform_6, window_bounds = array<i64: 1, 64, 128>}]} {
    %c0 = arith.constant 0 : index
    %c0_0 = arith.constant 0 : index
    %c0_1 = arith.constant 0 : index
    %0 = vector.load %arg5[%c0, %c0_0, %c0_1] : memref<1x64x3xf32, #tpu.memory_space<vmem>>, vector<1x64x3xf32>
    %1 = vector.shape_cast %0 : vector<1x64x3xf32> to vector<64x3xf32>
    %c0_2 = arith.constant 0 : index
    %c0_3 = arith.constant 0 : index
    %c0_4 = arith.constant 0 : index
    %2 = vector.load %arg2[%c0_2, %c0_3, %c0_4] : memref<1x64x128xf32, #tpu.memory_space<vmem>>, vector<1x64x128xf32>
    %3 = vector.shape_cast %2 : vector<1x64x128xf32> to vector<64x128xf32>
    %4 = vector.extract_strided_slice %1 {offsets = [0, 0], sizes = [64, 1], strides = [1, 1]} : vector<64x3xf32> to vector<64x1xf32>
    %5 = vector.broadcast %4 : vector<64x1xf32> to vector<64x128xf32>
    %6 = arith.mulf %3, %5 : vector<64x128xf32>
    %c0_5 = arith.constant 0 : index
    %c0_6 = arith.constant 0 : index
    %c0_7 = arith.constant 0 : index
    %7 = vector.load %arg3[%c0_5, %c0_6, %c0_7] : memref<1x64x128xf32, #tpu.memory_space<vmem>>, vector<1x64x128xf32>
    %8 = vector.shape_cast %7 : vector<1x64x128xf32> to vector<64x128xf32>
    %9 = vector.extract_strided_slice %1 {offsets = [0, 1], sizes = [64, 1], strides = [1, 1]} : vector<64x3xf32> to vector<64x1xf32>
    %10 = vector.broadcast %9 : vector<64x1xf32> to vector<64x128xf32>
    %11 = arith.mulf %8, %10 : vector<64x128xf32>
    %12 = arith.addf %6, %11 : vector<64x128xf32>
    %c0_8 = arith.constant 0 : index
    %c0_9 = arith.constant 0 : index
    %c0_10 = arith.constant 0 : index
    %13 = vector.load %arg4[%c0_8, %c0_9, %c0_10] : memref<1x64x128xf32, #tpu.memory_space<vmem>>, vector<1x64x128xf32>
    %14 = vector.shape_cast %13 : vector<1x64x128xf32> to vector<64x128xf32>
    %15 = vector.extract_strided_slice %1 {offsets = [0, 2], sizes = [64, 1], strides = [1, 1]} : vector<64x3xf32> to vector<64x1xf32>
    %16 = vector.broadcast %15 : vector<64x1xf32> to vector<64x128xf32>
    %17 = arith.mulf %14, %16 : vector<64x128xf32>
    %18 = arith.addf %12, %17 : vector<64x128xf32>
    %c0_11 = arith.constant 0 : index
    %c0_12 = arith.constant 0 : index
    %19 = vector.load %arg6[%c0_11, %c0_12] : memref<64x64xf32, #tpu.memory_space<vmem>>, vector<64x64xf32>
    %cst = arith.constant dense<0.000000e+00> : vector<64x128xf32>
    %20 = tpu.matmul %19, %18, %cst {dimension_numbers = #tpu.dot_dimension_numbers<[1], [0], [0], [1], [0, 0, 1, 1], [], []>} : vector<64x64xf32>, vector<64x128xf32>, vector<64x128xf32> -> vector<64x128xf32>
    %c0_13 = arith.constant 0 : index
    %c0_14 = arith.constant 0 : index
    %21 = vector.load %arg7[%c0_13, %c0_14] : memref<64x1xf32, #tpu.memory_space<vmem>>, vector<64x1xf32>
    %22 = vector.broadcast %21 : vector<64x1xf32> to vector<64x128xf32>
    %23 = arith.addf %20, %22 : vector<64x128xf32>
    %c0_15 = arith.constant 0 : index
    %c0_16 = arith.constant 0 : index
    %c0_17 = arith.constant 0 : index
    %24 = vector.load %arg8[%c0_15, %c0_16, %c0_17] : memref<1x64x128xf32, #tpu.memory_space<vmem>>, vector<1x64x128xf32>
    %25 = vector.shape_cast %24 : vector<1x64x128xf32> to vector<64x128xf32>
    %26 = vector.shape_cast %23 : vector<64x128xf32> to vector<1x64x128xf32>
    tpu.vector_store %arg8[%c0_15, %c0_16, %c0_17], %26 {strides = array<i32>} : memref<1x64x128xf32, #tpu.memory_space<vmem>>, vector<1x64x128xf32>,
    return
  }
  func.func @transform_0(%arg0: i32, %arg1: i32) -> (i32, i32, i32) {
    %c0_i32 = arith.constant 0 : i32
    %c0_i32_0 = arith.constant 0 : i32
    return %arg0, %c0_i32, %arg1 : i32, i32, i32
  }
  func.func @transform_1(%arg0: i32, %arg1: i32) -> (i32, i32, i32) {
    %c0_i32 = arith.constant 0 : i32
    %c0_i32_0 = arith.constant 0 : i32
    return %arg0, %c0_i32, %arg1 : i32, i32, i32
  }
  func.func @transform_2(%arg0: i32, %arg1: i32) -> (i32, i32, i32) {
    %c0_i32 = arith.constant 0 : i32
    %c0_i32_0 = arith.constant 0 : i32
    return %arg0, %c0_i32, %arg1 : i32, i32, i32
  }
  func.func @transform_3(%arg0: i32, %arg1: i32) -> (i32, i32, i32) {
    %c0_i32 = arith.constant 0 : i32
    %c0_i32_0 = arith.constant 0 : i32
    %c0_i32_1 = arith.constant 0 : i32
    return %arg0, %c0_i32, %c0_i32_0 : i32, i32, i32
  }
  func.func @transform_4(%arg0: i32, %arg1: i32) -> (i32, i32) {
    %c0_i32 = arith.constant 0 : i32
    %c0_i32_0 = arith.constant 0 : i32
    %c0_i32_1 = arith.constant 0 : i32
    return %c0_i32, %c0_i32_0 : i32, i32
  }
  func.func @transform_5(%arg0: i32, %arg1: i32) -> (i32, i32) {
    %c0_i32 = arith.constant 0 : i32
    %c0_i32_0 = arith.constant 0 : i32
    %c0_i32_1 = arith.constant 0 : i32
    return %c0_i32, %c0_i32_0 : i32, i32
  }
  func.func @transform_6(%arg0: i32, %arg1: i32) -> (i32, i32, i32) {
    %c0_i32 = arith.constant 0 : i32
    %c0_i32_0 = arith.constant 0 : i32
    return %arg0, %c0_i32, %arg1 : i32, i32, i32
  }
}

</mosaic_0001>

<bundles_post_ra>
// kernel: s2_attention.2
= control target key start
LH: loop header
LB: loop body
LE: loop exit
PB: predicated region body
PF: predicated region fallthrough
CT: control target
= control target key end

     0   :  { %s1015_s12 = smov 0   ;;  %s1017_s13 = smov 0   ;;  %s1381_s0 = inlined_call_operand.vmem [shape: f32[2,64,256], index: 0, kind: input, shape index: {}]   ;;  %s1382_s1 = inlined_call_operand.vmem [shape: f32[192,64], index: 1, kind: input, shape index: {}]   ;;  %s1383_s2 = inlined_call_operand.vmem [shape: f32[192,1], index: 2, kind: input, shape index: {}]   ;;  %s1384_s3 = inlined_call_operand.vmem [shape: f32[2,192,256], index: 3, kind: output, shape index: {}]  }
   0x1   :  { %s1019_s14 = smov 0   ;;  %s1021_s15 = smov 0  }
   0x2   :  { %s1023_s16 = smov 0   ;;  %s1025_s17 = smov 0  }
   0x3   :  { %s1027_s18 = smov 0  }
   0x4 LB: > { %s22_s19 = sadd.s32 1, %s984_s16  ;;  %s25_s20 = sadd.s32 1, %s988_s17  ;;  %s992_s18 = sphi %s1027_s18, %s13_s18   ;;  %s988_s17 = sphi %s1025_s17, %s1391_s17   ;;  %s984_s16 = sphi %s1023_s16, %s1390_s16   ;;  %s980_s15 = sphi %s1021_s15, %s1389_s15   ;;  %s976_s14 = sphi %s1019_s14, %s1388_s14   ;;  %s972_s13 = sphi %s1017_s13, %s1387_s13   ;;  %s968_s12 = sphi %s1015_s12, %s1386_s12  }
   0x5   : > { %p23_p0 = scmp.ge.s32.totalorder %s22_s19, 2  ;;  %s816_s21 = sadd.s32 4294967295, %s992_s18  }
   0x6   : > { %p41_p1 = scmp.ne.s32.totalorder %s972_s13, %s968_s12  ;;  %p42_p2 = scmp.eq.s32.totalorder %s992_s18, 0 }
   0x7   : > { %s1393_s19 = smov (%p23_p0, %s22_s19), 0  ;;  %s1395_s20 = smov (!%p23_p0, %s25_s20), %s988_s17 }
   0x8   : > { %p27_p3 = scmp.ge.s32.totalorder %s1395_s20, 2  ;;  %p115_p4 = scmp.eq.s32.totalorder %s816_s21, 3 }
   0x9   : > { %s30_s22 = ssub.s32 %s984_s16, %s1393_s19  ;;  %p43_p5 = por %p42_p2, %p41_p1 }
   0xa   : > { %s1397_s20 = smov (%p27_p3, %s1395_s20), 0  ;;  %p1063_p6 = por %p115_p4, %p41_p1 }
   0xb   : > { %s29_s24 = ssub.s32 %s988_s17, %s1397_s20  ;;  %s34_s26 = sadd.s32 1, %s972_s13 }
   0xc   : > { %s31_s25 = sor.u32 %s30_s22, %s29_s24  ;;  %p819_p8 = scmp.ge.s32.totalorder %s992_s18, 4 }
   0xd   : > { %p32_p7 = scmp.eq.s32.totalorder %s31_s25, 0 }
   0xe   : > { %143 = sbr.rel (%p819_p8) target bundleno = 33 (0x21), region = 24 }
   0xf   : > { %s1071_s27 = scalar_select %p32_p7, %s972_s13, %s34_s26  }
  0x13   : > { %146 = sbr.rel (!%p43_p5) target bundleno = 33 (0x21), region = 28  ;;  %s148_s28 = sand.u32 (%p43_p5), 1, %s972_s13  }
  0x14   : > { %s821_s29 = sshll.u32 (%p43_p5), %s988_s17, 4  ;;  %s820_s30 = sshll.u32 (%p43_p5), %s148_s28, 6 }
  0x15   : > { %s152_s4 = sadd.s32 (%p43_p5), %s984_s16, %s821_s29  ;;  %s150_s9 = scalar_lea.vmem (%p43_p5), [#allocation2], %s820_s30 }
  0x16   : > { %s822_s5 = sshll.u32 (%p43_p5), %s152_s4, 3 }
  0x17   : > { %s154_s8 = scalar_lea.vmem (%p43_p5), %s1381_s0, %s822_s5 }
  0x18   : > { %v197_v0 = vld [vmem:[%s154_s8] sm:$0xff]  ;;  %v199_v1 = vld [vmem:[%s154_s8 + $0x10] sm:$0xff] }
  0x19   : > { %v201_v2 = vld [vmem:[%s154_s8 + $0x20] sm:$0xff]  ;;  %198 = vst [vmem:[%s150_s9] sm:$0xff] %v197_v0  ;;  %v203_v3 = vld [vmem:[%s154_s8 + $0x30] sm:$0xff] }
  0x1a   : > { %200 = vst [vmem:[%s150_s9 + $0x8] sm:$0xff] %v199_v1  ;;  %v205_v4 = vld [vmem:[%s154_s8 + $0x40] sm:$0xff]  ;;  %v207_v5 = vld [vmem:[%s154_s8 + $0x50] sm:$0xff] }
  0x1b   : > { %202 = vst [vmem:[%s150_s9 + $0x10] sm:$0xff] %v201_v2  ;;  %v209_v6 = vld [vmem:[%s154_s8 + $0x60] sm:$0xff]  ;;  %v211_v7 = vld [vmem:[%s154_s8 + $0x70] sm:$0xff] }
  0x1c   : > { %204 = vst [vmem:[%s150_s9 + $0x18] sm:$0xff] %v203_v3 }
  0x1d   : > { %206 = vst [vmem:[%s150_s9 + $0x20] sm:$0xff] %v205_v4 }
  0x1e   : > { %208 = vst [vmem:[%s150_s9 + $0x28] sm:$0xff] %v207_v5 }
  0x1f   : > { %210 = vst [vmem:[%s150_s9 + $0x30] sm:$0xff] %v209_v6 }
  0x20   : > { %212 = vst [vmem:[%s150_s9 + $0x38] sm:$0xff] %v211_v7 }
  0x21 PF: > { %p823_p9 = scmp.ge.s32.totalorder %s992_s18, 1  ;;  %p217_p10 = scmp.lt.s32.totalorder %s992_s18, 5 }
  0x23   : > { %p218_p11 = pnand %p823_p9, %p217_p10 }
  0x24   : > { %s224_s26 = sand.u32 (!%p218_p11), 1, %s968_s12  }
  0x25   : > { %221 = sbr.rel (%p218_p11) target bundleno = 252 (0xfc), region = 66  ;;  %s824_s28 = sshll.u32 (!%p218_p11), %s224_s26, 6 }
  0x26   : > { %s1094_s29 = scalar_lea.vmem (!%p218_p11), [#allocation2], %s824_s28  ;;  %s876_s4 = smul.u32 (!%p218_p11), 192, %s224_s26 }
  0x28   : > { %s1273_s5 = scalar_lea.vmem (!%p218_p11), [#allocation3], %s876_s4 }
  0x2a   : > { %v282_v8 = vld [vmem:[%s1383_s2 + $0x20] sm:$0xff]  ;;  %v280_v9 = vld [vmem:[%s1383_s2 + $0x10] sm:$0xff]  ;;  %v994_v11 = vmov 0   ;;  %v277_v12 = vld [vmem:[%s1094_s29 + $0x38] sm:$0xff]  ;;  %vm422_vm0 = vcmask 523264   ;;  %s877_s12 = smul.u32 (%p1063_p6), 48, %s980_s15 }
  0x2b   : > { %v278_v10 = vld [vmem:[%s1383_s2] sm:$0xff]  ;;  %937 = vset.pattern.permute.xlu2 %v994_v11  ;;  %936 = vset.pattern.permute.xlu1 %v994_v11  ;;  %v276_v13 = vld [vmem:[%s1094_s29 + $0x30] sm:$0xff]  ;;  %v275_v14 = vld [vmem:[%s1094_s29 + $0x28] sm:$0xff] }
  0x2c   : > { %935 = vset.pattern.permute.xlu0 %v994_v11  ;;  %324 = vperm.xlu2 %937, %v282_v8   ;;  %v283_v15 = vld [vmem:[%s1383_s2 + $0x28] sm:$0xff]  ;;  %v274_v16 = vld [vmem:[%s1094_s29 + $0x20] sm:$0xff]  ;;  %v281_v17 = vld [vmem:[%s1383_s2 + $0x18] sm:$0xff]  ;;  %s616_s26 = sadd.s32 (%p1063_p6), %s976_s14, %s877_s12 }
  0x2d   : > { %314 = vperm.xlu1 %936, %v280_v9   ;;  %304 = vperm.xlu0 %935, %v278_v10   ;;  %v279_v18 = vld [vmem:[%s1383_s2 + $0x8] sm:$0xff]  ;;  %v273_v19 = vld [vmem:[%s1094_s29 + $0x18] sm:$0xff]  ;;  %v272_v20 = vld [vmem:[%s1094_s29 + $0x10] sm:$0xff]  ;;  %s849_s6 = sshll.u32 (%p1063_p6), %s616_s26, 3 }
  0x2e   : > { %503 = vmatpush.msra.mxu0 %v277_v12  ;;  %852 = vmatpush.msra.mxu1 %v277_v12  ;;  %v271_v21 = vld [vmem:[%s1094_s29 + $0x8] sm:$0xff]  ;;  %v286_v22 = vld [vmem:[%s1383_s2 + $0x40] sm:$0xff]  ;;  %v285_v23 = vld [vmem:[%s1383_s2 + $0x38] sm:$0xff]  ;;  %s1312_s23 = scalar_lea.vmem (%p1063_p6), %s1384_s3, %s849_s6 }
  0x2f   : > { %853 = vmatpush.msra.mxu2 %v277_v12  ;;  %854 = vmatpush.msra.mxu3 %v277_v12  ;;  %v284_v24 = vld [vmem:[%s1383_s2 + $0x30] sm:$0xff]  ;;  %v270_v25 = vld [vmem:[%s1094_s29] sm:$0xff]  ;;  %v289_v30 = vld [vmem:[%s1383_s2 + $0x58] sm:$0xff] }
  0x30   : > { %504 = vmatpush.msra.mxu0 %v276_v13  ;;  %855 = vmatpush.msra.mxu1 %v276_v13  ;;  %v246_v26 = vld [vmem:[%s1382_s1] sm:$0xff]  ;;  %v252_v27 = vld [vmem:[%s1382_s1 + $0x30] sm:$0xff]  ;;  %v287_v32 = vld [vmem:[%s1383_s2 + $0x48] sm:$0xff] }
  0x31   : > { %856 = vmatpush.msra.mxu2 %v276_v13  ;;  %857 = vmatpush.msra.mxu3 %v276_v13  ;;  %v258_v28 = vld [vmem:[%s1382_s1 + $0x60] sm:$0xff]  ;;  %v264_v29 = vld [vmem:[%s1382_s1 + $0x90] sm:$0xff]  ;;  %v247_v33 = vld [vmem:[%s1382_s1 + $0x8] sm:$0xff] }
  0x32   : > { %505 = vmatpush.msra.mxu0 %v275_v14  ;;  %858 = vmatpush.msra.mxu1 %v275_v14  ;;  %v288_v31 = vld [vmem:[%s1383_s2 + $0x50] sm:$0xff]  ;;  %v253_v34 = vld [vmem:[%s1382_s1 + $0x38] sm:$0xff]  ;;  %v259_v35 = vld [vmem:[%s1382_s1 + $0x68] sm:$0xff] }
  0x33   : > { %859 = vmatpush.msra.mxu2 %v275_v14  ;;  %860 = vmatpush.msra.mxu3 %v275_v14  ;;  %v265_v36 = vld [vmem:[%s1382_s1 + $0x98] sm:$0xff]  ;;  %v292_v37 = vld [vmem:[%s1383_s2 + $0x70] sm:$0xff]  ;;  %v291_v38 = vld [vmem:[%s1383_s2 + $0x68] sm:$0xff] }
  0x34   : > { %329 = vperm.xlu2 %937, %v283_v15   ;;  %506 = vmatpush.msra.mxu0 %v274_v16  ;;  %v290_v39 = vld [vmem:[%s1383_s2 + $0x60] sm:$0xff]  ;;  %v248_v40 = vld [vmem:[%s1382_s1 + $0x10] sm:$0xff]  ;;  %v295_v44 = vld [vmem:[%s1383_s2 + $0x88] sm:$0xff] }
  0x35   : > { %319 = vperm.xlu1 %936, %v281_v17   ;;  %309 = vperm.xlu0 %935, %v279_v18   ;;  %v254_v41 = vld [vmem:[%s1382_s1 + $0x40] sm:$0xff]  ;;  %v260_v42 = vld [vmem:[%s1382_s1 + $0x70] sm:$0xff]  ;;  %v293_v46 = vld [vmem:[%s1383_s2 + $0x78] sm:$0xff] }
  0x36   : > { %861 = vmatpush.msra.mxu1 %v274_v16  ;;  %862 = vmatpush.msra.mxu2 %v274_v16  ;;  %v266_v43 = vld [vmem:[%s1382_s1 + $0xa0] sm:$0xff]  ;;  %v249_v47 = vld [vmem:[%s1382_s1 + $0x18] sm:$0xff]  ;;  %v255_v48 = vld [vmem:[%s1382_s1 + $0x48] sm:$0xff] }
  0x37   : > { %863 = vmatpush.msra.mxu3 %v274_v16  ;;  %507 = vmatpush.msra.mxu0 %v273_v19  ;;  %v294_v45 = vld [vmem:[%s1383_s2 + $0x80] sm:$0xff]  ;;  %v261_v49 = vld [vmem:[%s1382_s1 + $0x78] sm:$0xff]  ;;  %v267_v50 = vld [vmem:[%s1382_s1 + $0xa8] sm:$0xff] }
  0x38   : > { %864 = vmatpush.msra.mxu1 %v273_v19  ;;  %865 = vmatpush.msra.mxu2 %v273_v19  ;;  %v298_v51 = vld [vmem:[%s1383_s2 + $0xa0] sm:$0xff]  ;;  %v297_v52 = vld [vmem:[%s1383_s2 + $0x98] sm:$0xff]  ;;  %v296_v53 = vld [vmem:[%s1383_s2 + $0x90] sm:$0xff] }
  0x39   : > { %866 = vmatpush.msra.mxu3 %v273_v19  ;;  %508 = vmatpush.msra.mxu0 %v272_v20  ;;  %v250_v54 = vld [vmem:[%s1382_s1 + $0x20] sm:$0xff]  ;;  %v256_v55 = vld [vmem:[%s1382_s1 + $0x50] sm:$0xff]  ;;  %v301_v58 = vld [vmem:[%s1383_s2 + $0xb8] sm:$0xff] }
  0x3a   : > { %867 = vmatpush.msra.mxu1 %v272_v20  ;;  %868 = vmatpush.msra.mxu2 %v272_v20  ;;  %v262_v56 = vld [vmem:[%s1382_s1 + $0x80] sm:$0xff]  ;;  %v268_v57 = vld [vmem:[%s1382_s1 + $0xb0] sm:$0xff]  ;;  %v299_v60 = vld [vmem:[%s1383_s2 + $0xa8] sm:$0xff] }
  0x3b   : > { %869 = vmatpush.msra.mxu3 %v272_v20  ;;  %509 = vmatpush.msra.mxu0 %v271_v21  ;;  %v300_v59 = vld [vmem:[%s1383_s2 + $0xb0] sm:$0xff]  ;;  %v251_v61 = vld [vmem:[%s1382_s1 + $0x28] sm:$0xff]  ;;  %v257_v62 = vld [vmem:[%s1382_s1 + $0x58] sm:$0xff] }
  0x3c   : > { %870 = vmatpush.msra.mxu1 %v271_v21  ;;  %871 = vmatpush.msra.mxu2 %v271_v21  ;;  %v263_v63 = vld [vmem:[%s1382_s1 + $0x88] sm:$0xff]  ;;  %v269_v0 = vld [vmem:[%s1382_s1 + $0xb8] sm:$0xff] }
  0x3d   : > { %872 = vmatpush.msra.mxu3 %v271_v21  ;;  %344 = vperm.xlu2 %937, %v286_v22  }
  0x3e   : > { %339 = vperm.xlu1 %936, %v285_v23   ;;  %334 = vperm.xlu0 %935, %v284_v24  }
  0x3f   : > { %510 = vmatpush.msra.mxu0 %v270_v25  ;;  %873 = vmatpush.msra.mxu1 %v270_v25 }
  0x40   : > { %874 = vmatpush.msra.mxu2 %v270_v25  ;;  %875 = vmatpush.msra.mxu3 %v270_v25 }
  0x41   : > { %825 = vmatmul.msk.f32.vlgmr.msra.gmra.mxu0 %vm422_vm0, %v246_v26  ;;  %831 = vmatmul.msk.f32.vlgmr.msra.gmra.mxu1 %vm422_vm0, %v252_v27 }
  0x42   : > { %837 = vmatmul.msk.f32.vlgmr.msra.gmra.mxu2 %vm422_vm0, %v258_v28  ;;  %843 = vmatmul.msk.f32.vlgmr.msra.gmra.mxu3 %vm422_vm0, %v264_v29 }
  0x45   : > { %359 = vperm.xlu2 %937, %v289_v30  }
  0x46   : > { %354 = vperm.xlu1 %936, %v288_v31   ;;  %349 = vperm.xlu0 %935, %v287_v32  }
  0x49   : > { %826 = vmatmul.msk.f32.gmra.mxu0 %vm422_vm0, %v247_v33  ;;  %832 = vmatmul.msk.f32.gmra.mxu1 %vm422_vm0, %v253_v34 }
  0x4a   : > { %838 = vmatmul.msk.f32.gmra.mxu2 %vm422_vm0, %v259_v35  ;;  %844 = vmatmul.msk.f32.gmra.mxu3 %vm422_vm0, %v265_v36 }
  0x4d   : > { %374 = vperm.xlu2 %937, %v292_v37  }
  0x4e   : > { %369 = vperm.xlu1 %936, %v291_v38   ;;  %364 = vperm.xlu0 %935, %v290_v39  }
  0x51   : > { %827 = vmatmul.msk.f32.gmra.mxu0 %vm422_vm0, %v248_v40  ;;  %833 = vmatmul.msk.f32.gmra.mxu1 %vm422_vm0, %v254_v41 }
  0x52   : > { %839 = vmatmul.msk.f32.gmra.mxu2 %vm422_vm0, %v260_v42  ;;  %845 = vmatmul.msk.f32.gmra.mxu3 %vm422_vm0, %v266_v43 }
  0x55   : > { %389 = vperm.xlu2 %937, %v295_v44  }
  0x56   : > { %384 = vperm.xlu1 %936, %v294_v45   ;;  %379 = vperm.xlu0 %935, %v293_v46  }
  0x59   : > { %828 = vmatmul.msk.f32.gmra.mxu0 %vm422_vm0, %v249_v47  ;;  %834 = vmatmul.msk.f32.gmra.mxu1 %vm422_vm0, %v255_v48 }
  0x5a   : > { %840 = vmatmul.msk.f32.gmra.mxu2 %vm422_vm0, %v261_v49  ;;  %846 = vmatmul.msk.f32.gmra.mxu3 %vm422_vm0, %v267_v50 }
  0x5d   : > { %404 = vperm.xlu2 %937, %v298_v51  }
  0x5e   : > { %399 = vperm.xlu1 %936, %v297_v52   ;;  %394 = vperm.xlu0 %935, %v296_v53  }
  0x61   : > { %829 = vmatmul.msk.f32.gmra.mxu0 %vm422_vm0, %v250_v54  ;;  %835 = vmatmul.msk.f32.gmra.mxu1 %vm422_vm0, %v256_v55 }
  0x62   : > { %841 = vmatmul.msk.f32.gmra.mxu2 %vm422_vm0, %v262_v56  ;;  %847 = vmatmul.msk.f32.gmra.mxu3 %vm422_vm0, %v268_v57 }
  0x65   : > { %419 = vperm.xlu2 %937, %v301_v58  }
  0x66   : > { %414 = vperm.xlu1 %936, %v300_v59   ;;  %409 = vperm.xlu0 %935, %v299_v60  }
  0x69   : > { %830 = vmatmul.msk.f32.gmra.mxu0 %vm422_vm0, %v251_v61  ;;  %836 = vmatmul.msk.f32.gmra.mxu1 %vm422_vm0, %v257_v62 }
  0x6a   : > { %842 = vmatmul.msk.f32.gmra.mxu2 %vm422_vm0, %v263_v63  ;;  %848 = vmatmul.msk.f32.gmra.mxu3 %vm422_vm0, %v269_v0 }
  0x86   : > { %v1263_v1 = vpop.permute.xlu2 %324 }
  0x8e   : > { %v1265_v4 = vpop.permute.xlu2 %329 }
  0x97   : > { %v345_v7 = vpop.permute.xlu2 %344 }
  0x9f   : > { %v315_v2 = vpop.permute.xlu1 %314  ;;  %v305_v3 = vpop.permute.xlu0 %304 }
  0xa0   : > { %v1267_v10 = vpop.permute.xlu2 %359 }
  0xa7   : > { %v320_v5 = vpop.permute.xlu1 %319  ;;  %v310_v6 = vpop.permute.xlu0 %309 }
  0xa8   : > { %v375_v15 = vpop.permute.xlu2 %374 }
  0xb0   : > { %v340_v8 = vpop.permute.xlu1 %339  ;;  %v335_v9 = vpop.permute.xlu0 %334 }
  0xb1   : > { %v390_v29 = vpop.permute.xlu2 %389 }
  0xb8   : > { %v1269_v11 = vpop.permute.xlu1 %354  ;;  %v350_v12 = vpop.permute.xlu0 %349 }
  0xb9   : > { %v405_v41 = vpop.permute.xlu2 %404 }
  0xbe   : > { %v512_v13 = vpop.f32.mrf.mxu0  ;;  %v530_v14 = vpop.f32.mrf.mxu1 }
  0xbf   : > { %v513_v16 = vadd.f32 %v512_v13, %v305_v3  ;;  %v531_v17 = vadd.f32 %v530_v14, %v335_v9 }
  0xc0   : > { %v370_v18 = vpop.permute.xlu1 %369  ;;  %v365_v19 = vpop.permute.xlu0 %364 }
  0xc1   : > { %584 = vst [vmem:[%s1273_s5] sm:$0xff] %v513_v16 }
  0xc2   : > { %590 = vst [vmem:[%s1273_s5 + $0x30] sm:$0xff] %v531_v17 }
  0xc5   : > { %v548_v20 = vpop.f32.mrf.mxu2  ;;  %v566_v21 = vpop.f32.mrf.mxu3 }
  0xc6   : > { %v549_v22 = vadd.f32 %v548_v20, %v365_v19  ;;  %v515_v23 = vpop.f32.mrf.mxu0  ;;  %v533_v24 = vpop.f32.mrf.mxu1 }
  0xc7   : > { %v516_v25 = vadd.f32 %v515_v23, %v310_v6  ;;  %v534_v26 = vadd.f32 %v533_v24, %v340_v8 }
  0xc8   : > { %596 = vst [vmem:[%s1273_s5 + $0x60] sm:$0xff] %v549_v22  ;;  %v385_v27 = vpop.permute.xlu1 %384  ;;  %v380_v28 = vpop.permute.xlu0 %379 }
  0xc9   : > { %585 = vst [vmem:[%s1273_s5 + $0x8] sm:$0xff] %v516_v25 }
  0xca   : > { %591 = vst [vmem:[%s1273_s5 + $0x38] sm:$0xff] %v534_v26 }
  0xcd   : > { %v551_v30 = vpop.f32.mrf.mxu2  ;;  %v569_v31 = vpop.f32.mrf.mxu3 }
  0xce   : > { %v552_v32 = vadd.f32 %v551_v30, %v370_v18  ;;  %v518_v33 = vpop.f32.mrf.mxu0  ;;  %v536_v34 = vpop.f32.mrf.mxu1 }
  0xcf   : > { %v519_v35 = vadd.f32 %v518_v33, %v315_v2  ;;  %v537_v36 = vadd.f32 %v536_v34, %v345_v7 }
  0xd0   : > { %597 = vst [vmem:[%s1273_s5 + $0x68] sm:$0xff] %v552_v32  ;;  %v400_v37 = vpop.permute.xlu1 %399  ;;  %v395_v38 = vpop.permute.xlu0 %394 }
  0xd1   : > { %586 = vst [vmem:[%s1273_s5 + $0x10] sm:$0xff] %v519_v35  ;;  %v570_v39 = vadd.f32 %v569_v31, %v400_v37  ;;  %v567_v40 = vadd.f32 %v566_v21, %v395_v38  ;;  %v707_v16 = vld [vmem:[%s1273_s5 + $0x38] sm:$0xff] (%p1063_p6)  ;;  %v717_v21 = vld [vmem:[%s1273_s5 + $0x60] sm:$0xff] (%p1063_p6) }
  0xd2   : > { %592 = vst [vmem:[%s1273_s5 + $0x40] sm:$0xff] %v537_v36 }
  0xd3   : > { %603 = vst [vmem:[%s1273_s5 + $0x98] sm:$0xff] %v570_v39 }
  0xd4   : > { %602 = vst [vmem:[%s1273_s5 + $0x90] sm:$0xff] %v567_v40 }
  0xd5   : > { %v554_v42 = vpop.f32.mrf.mxu2  ;;  %v572_v43 = vpop.f32.mrf.mxu3  ;;  %708 = vst [vmem:[%s1312_s23 + $0x70] sm:$0xff] (%p1063_p6), %v707_v16 }
  0xd6   : > { %v555_v44 = vadd.f32 %v554_v42, %v375_v15  ;;  %v573_v45 = vadd.f32 %v572_v43, %v405_v41  ;;  %v521_v46 = vpop.f32.mrf.mxu0  ;;  %v539_v47 = vpop.f32.mrf.mxu1  ;;  %v705_v15 = vld [vmem:[%s1273_s5 + $0x30] sm:$0xff] (%p1063_p6)  ;;  %718 = vst [vmem:[%s1312_s23 + $0xc0] sm:$0xff] (%p1063_p6), %v717_v21 }
  0xd7   : > { %v522_v48 = vadd.f32 %v521_v46, %v320_v5  ;;  %v540_v49 = vadd.f32 %v539_v47, %v350_v12  ;;  %v420_v5 = vpop.permute.xlu2 %419  ;;  %706 = vst [vmem:[%s1312_s23 + $0x60] sm:$0xff] (%p1063_p6), %v705_v15  ;;  %v719_v22 = vld [vmem:[%s1273_s5 + $0x68] sm:$0xff] (%p1063_p6) }
  0xd8   : > { %598 = vst [vmem:[%s1273_s5 + $0x70] sm:$0xff] %v555_v44  ;;  %v410_v50 = vpop.permute.xlu0 %409  ;;  %v415_v59 = vpop.permute.xlu1 %414 }
  0xd9   : > { %604 = vst [vmem:[%s1273_s5 + $0xa0] sm:$0xff] %v573_v45  ;;  %v709_v17 = vld [vmem:[%s1273_s5 + $0x40] sm:$0xff] (%p1063_p6) }
  0xda   : > { %587 = vst [vmem:[%s1273_s5 + $0x18] sm:$0xff] %v522_v48 }
  0xdb   : > { %593 = vst [vmem:[%s1273_s5 + $0x48] sm:$0xff] %v540_v49 }
  0xdc   : > { %710 = vst [vmem:[%s1312_s23 + $0x80] sm:$0xff] (%p1063_p6), %v709_v17 }
  0xdd   : > { %v557_v51 = vpop.f32.mrf.mxu2  ;;  %v575_v52 = vpop.f32.mrf.mxu3  ;;  %720 = vst [vmem:[%s1312_s23 + $0xd0] sm:$0xff] (%p1063_p6), %v719_v22 }
  0xde   : > { %v558_v53 = vadd.f32 %v557_v51, %v380_v28  ;;  %v576_v54 = vadd.f32 %v575_v52, %v410_v50  ;;  %v524_v55 = vpop.f32.mrf.mxu0  ;;  %v542_v56 = vpop.f32.mrf.mxu1  ;;  %v731_v28 = vld [vmem:[%s1273_s5 + $0x98] sm:$0xff] (%p1063_p6) }
  0xdf   : > { %v525_v57 = vadd.f32 %v524_v55, %v1263_v1  ;;  %v543_v58 = vadd.f32 %v542_v56, %v1269_v11  ;;  %v697_v11 = vld [vmem:[%s1273_s5 + $0x10] sm:$0xff] (%p1063_p6)  ;;  %732 = vst [vmem:[%s1312_s23 + $0x130] sm:$0xff] (%p1063_p6), %v731_v28 }
  0xe0   : > { %599 = vst [vmem:[%s1273_s5 + $0x78] sm:$0xff] %v558_v53  ;;  %v721_v23 = vld [vmem:[%s1273_s5 + $0x70] sm:$0xff] (%p1063_p6) }
  0xe1   : > { %605 = vst [vmem:[%s1273_s5 + $0xa8] sm:$0xff] %v576_v54  ;;  %v699_v12 = vld [vmem:[%s1273_s5 + $0x18] sm:$0xff] (%p1063_p6) }
  0xe2   : > { %588 = vst [vmem:[%s1273_s5 + $0x20] sm:$0xff] %v525_v57  ;;  %v711_v18 = vld [vmem:[%s1273_s5 + $0x48] sm:$0xff] (%p1063_p6) }
  0xe3   : > { %594 = vst [vmem:[%s1273_s5 + $0x50] sm:$0xff] %v543_v58 }
  0xe4   : > { %698 = vst [vmem:[%s1312_s23 + $0x20] sm:$0xff] (%p1063_p6), %v697_v11 }
  0xe5   : > { %v560_v60 = vpop.f32.mrf.mxu2  ;;  %v578_v61 = vpop.f32.mrf.mxu3  ;;  %700 = vst [vmem:[%s1312_s23 + $0x30] sm:$0xff] (%p1063_p6), %v699_v12 }
  0xe6   : > { %v561_v62 = vadd.f32 %v560_v60, %v385_v27  ;;  %v579_v63 = vadd.f32 %v578_v61, %v415_v59  ;;  %v527_v0 = vpop.f32.mrf.mxu0  ;;  %v545_v2 = vpop.f32.mrf.mxu1  ;;  %712 = vst [vmem:[%s1312_s23 + $0x90] sm:$0xff] (%p1063_p6), %v711_v18  ;;  %v729_v27 = vld [vmem:[%s1273_s5 + $0x90] sm:$0xff] (%p1063_p6) }
  0xe7   : > { %v528_v1 = vadd.f32 %v527_v0, %v1265_v4  ;;  %v546_v3 = vadd.f32 %v545_v2, %v1267_v10  ;;  %v693_v4 = vld [vmem:[%s1273_s5] sm:$0xff] (%p1063_p6)  ;;  %v695_v10 = vld [vmem:[%s1273_s5 + $0x8] sm:$0xff] (%p1063_p6)  ;;  %v723_v24 = vld [vmem:[%s1273_s5 + $0x78] sm:$0xff] (%p1063_p6)  ;;  %722 = vst [vmem:[%s1312_s23 + $0xe0] sm:$0xff] (%p1063_p6), %v721_v23 }
  0xe8   : > { %600 = vst [vmem:[%s1273_s5 + $0x80] sm:$0xff] %v561_v62  ;;  %v735_v30 = vld [vmem:[%s1273_s5 + $0xa8] sm:$0xff] (%p1063_p6) }
  0xe9   : > { %606 = vst [vmem:[%s1273_s5 + $0xb0] sm:$0xff] %v579_v63  ;;  %v701_v13 = vld [vmem:[%s1273_s5 + $0x20] sm:$0xff] (%p1063_p6) }
  0xea   : > { %589 = vst [vmem:[%s1273_s5 + $0x28] sm:$0xff] %v528_v1  ;;  %v713_v19 = vld [vmem:[%s1273_s5 + $0x50] sm:$0xff] (%p1063_p6) }
  0xeb   : > { %595 = vst [vmem:[%s1273_s5 + $0x58] sm:$0xff] %v546_v3 }
  0xec   : > { %694 = vst [vmem:[%s1312_s23] sm:$0xff] (%p1063_p6), %v693_v4 }
  0xed   : > { %v563_v6 = vpop.f32.mrf.mxu2  ;;  %v581_v7 = vpop.f32.mrf.mxu3  ;;  %614 = sbr.rel (!%p1063_p6) target bundleno = 252 (0xfc), region = 74  ;;  %696 = vst [vmem:[%s1312_s23 + $0x10] sm:$0xff] (%p1063_p6), %v695_v10 }
  0xee   : > { %v564_v8 = vadd.f32 %v563_v6, %v390_v29  ;;  %v582_v9 = vadd.f32 %v581_v7, %v420_v5  ;;  %702 = vst [vmem:[%s1312_s23 + $0x40] sm:$0xff] (%p1063_p6), %v701_v13  ;;  %v733_v29 = vld [vmem:[%s1273_s5 + $0xa0] sm:$0xff] (%p1063_p6) }
  0xef   : > { %714 = vst [vmem:[%s1312_s23 + $0xa0] sm:$0xff] (%p1063_p6), %v713_v19  ;;  %v725_v25 = vld [vmem:[%s1273_s5 + $0x80] sm:$0xff] (%p1063_p6) }
  0xf0   : > { %601 = vst [vmem:[%s1273_s5 + $0x88] sm:$0xff] %v564_v8  ;;  %v737_v31 = vld [vmem:[%s1273_s5 + $0xb0] sm:$0xff] (%p1063_p6) }
  0xf1   : > { %607 = vst [vmem:[%s1273_s5 + $0xb8] sm:$0xff] %v582_v9  ;;  %v703_v14 = vld [vmem:[%s1273_s5 + $0x28] sm:$0xff] (%p1063_p6) }
  0xf2   : > { %704 = vst [vmem:[%s1312_s23 + $0x50] sm:$0xff] %v703_v14  ;;  %v715_v20 = vld [vmem:[%s1273_s5 + $0x58] sm:$0xff] }
  0xf3   : > { %716 = vst [vmem:[%s1312_s23 + $0xb0] sm:$0xff] %v715_v20 }
  0xf4   : > { %724 = vst [vmem:[%s1312_s23 + $0xf0] sm:$0xff] %v723_v24 }
  0xf5   : > { %726 = vst [vmem:[%s1312_s23 + $0x100] sm:$0xff] %v725_v25 }
  0xf6   : > { %730 = vst [vmem:[%s1312_s23 + $0x120] sm:$0xff] %v729_v27 }
  0xf7   : > { %v727_v26 = vld [vmem:[%s1273_s5 + $0x88] sm:$0xff]  ;;  %734 = vst [vmem:[%s1312_s23 + $0x140] sm:$0xff] %v733_v29 }
  0xf8   : > { %728 = vst [vmem:[%s1312_s23 + $0x110] sm:$0xff] %v727_v26  ;;  %v739_v32 = vld [vmem:[%s1273_s5 + $0xb8] sm:$0xff] }
  0xf9   : > { %736 = vst [vmem:[%s1312_s23 + $0x150] sm:$0xff] %v735_v30 }
  0xfa   : > { %738 = vst [vmem:[%s1312_s23 + $0x160] sm:$0xff] %v737_v31 }
  0xfb   : > { %740 = vst [vmem:[%s1312_s23 + $0x170] sm:$0xff] %v739_v32 }
  0xfc PF: > { %s13_s18 = sadd.s32 1, %s992_s18   ;;  %s1386_s12 = smov %s972_s13 }
  0xfd   : > { %p10_p12 = scmp.ge.s32.totalorder %s13_s18, 6   ;;  %s1387_s13 = smov %s1071_s27 }
  0xfe   : > { %s1388_s14 = smov %s984_s16  ;;  %s1389_s15 = smov %s988_s17 }
  0xff   : > { %s1390_s16 = smov %s1393_s19  ;;  %s1391_s17 = smov %s1397_s20 }
 0x100   :  { %12 = sbr.rel (!%p10_p12) target bundleno = 4 (0x4), region = 143 }

// kernel: s2_attention.3
= control target key start
LH: loop header
LB: loop body
LE: loop exit
PB: predicated region body
PF: predicated region fallthrough
CT: control target
= control target key end

     0   :  { %s1251_s21 = smov 0   ;;  %s1253_s22 = smov 0   ;;  %s1494_s0 = inlined_call_operand.vmem [shape: f32[2,64,256], index: 0, kind: input, shape index: {}]   ;;  %s1495_s1 = inlined_call_operand.vmem [shape: f32[2,64,256], index: 1, kind: input, shape index: {}]   ;;  %s1496_s2 = inlined_call_operand.vmem [shape: f32[2,64,256], index: 2, kind: input, shape index: {}]   ;;  %s1497_s3 = inlined_call_operand.vmem [shape: f32[2,64,3], index: 3, kind: input, shape index: {}]   ;;  %s1498_s4 = inlined_call_operand.vmem [shape: f32[64,64], index: 4, kind: input, shape index: {}]   ;;  %s1499_s5 = inlined_call_operand.vmem [shape: f32[64,1], index: 5, kind: input, shape index: {}]   ;;  %s1500_s6 = inlined_call_operand.vmem [shape: f32[2,64,256], index: 6, kind: output, shape index: {}]  }
   0x1   :  { %s1255_s23 = smov 0   ;;  %s1257_s24 = smov 0  }
   0x2   :  { %s1259_s25 = smov 0   ;;  %s1261_s26 = smov 0  }
   0x3   :  { %s1263_s27 = smov 0  }
   0x4 LB: > { %s25_s28 = sadd.s32 1, %s1203_s25  ;;  %s28_s29 = sadd.s32 1, %s1207_s26  ;;  %s1211_s27 = sphi %s1263_s27, %s16_s27   ;;  %s1207_s26 = sphi %s1261_s26, %s1508_s26   ;;  %s1203_s25 = sphi %s1259_s25, %s1507_s25   ;;  %s1199_s24 = sphi %s1257_s24, %s1506_s24   ;;  %s1195_s23 = sphi %s1255_s23, %s1505_s23   ;;  %s1191_s22 = sphi %s1253_s22, %s1504_s22   ;;  %s1187_s21 = sphi %s1251_s21, %s1503_s21  }
   0x5   : > { %p26_p0 = scmp.ge.s32.totalorder %s25_s28, 2  ;;  %s1023_s30 = sadd.s32 4294967295, %s1211_s27  }
   0x6   : > { %p44_p1 = scmp.ne.s32.totalorder %s1191_s22, %s1187_s21  ;;  %p45_p2 = scmp.eq.s32.totalorder %s1211_s27, 0 }
   0x7   : > { %s1510_s28 = smov (%p26_p0, %s25_s28), 0  ;;  %s1512_s29 = smov (!%p26_p0, %s28_s29), %s1207_s26 }
   0x8   : > { %p30_p3 = scmp.ge.s32.totalorder %s1512_s29, 2  ;;  %p200_p4 = scmp.eq.s32.totalorder %s1023_s30, 3 }
   0x9   : > { %s33_s7 = ssub.s32 %s1203_s25, %s1510_s28  ;;  %p1297_p5 = por %p45_p2, %p44_p1 }
   0xa   : > { %s1514_s29 = smov (%p30_p3, %s1512_s29), 0  ;;  %p1303_p6 = por %p200_p4, %p44_p1 }
   0xb   : > { %s32_s10 = ssub.s32 %s1207_s26, %s1514_s29  ;;  %s37_s12 = sadd.s32 1, %s1191_s22 }
   0xc   : > { %s34_s11 = sor.u32 %s33_s7, %s32_s10  ;;  %p1026_p8 = scmp.ge.s32.totalorder %s1211_s27, 4 }
   0xd   : > { %p35_p7 = scmp.eq.s32.totalorder %s34_s11, 0 }
   0xe   : > { %228 = sbr.rel (%p1026_p8) target bundleno = 61 (0x3d), region = 24 }
   0xf   : > { %s1311_s13 = scalar_select %p35_p7, %s1191_s22, %s37_s12  }
  0x13   : > { %231 = sbr.rel (!%p1297_p5) target bundleno = 33 (0x21), region = 28  ;;  %s233_s14 = sand.u32 (%p1297_p5), 1, %s1191_s22  }
  0x14   : > { %s1028_s15 = sshll.u32 (%p1297_p5), %s1207_s26, 4  ;;  %s1027_s16 = sshll.u32 (%p1297_p5), %s233_s14, 6 }
  0x15   : > { %s237_s17 = sadd.s32 (%p1297_p5), %s1203_s25, %s1028_s15  ;;  %s235_s7 = scalar_lea.vmem (%p1297_p5), [#allocation2], %s1027_s16 }
  0x16   : > { %s1029_s18 = sshll.u32 (%p1297_p5), %s237_s17, 3 }
  0x17   : > { %s239_s30 = scalar_lea.vmem (%p1297_p5), %s1494_s0, %s1029_s18 }
  0x18   : > { %v282_v0 = vld [vmem:[%s239_s30] sm:$0xff]  ;;  %v284_v1 = vld [vmem:[%s239_s30 + $0x10] sm:$0xff] }
  0x19   : > { %v286_v2 = vld [vmem:[%s239_s30 + $0x20] sm:$0xff]  ;;  %283 = vst [vmem:[%s235_s7] sm:$0xff] %v282_v0  ;;  %v288_v3 = vld [vmem:[%s239_s30 + $0x30] sm:$0xff] }
  0x1a   : > { %285 = vst [vmem:[%s235_s7 + $0x8] sm:$0xff] %v284_v1  ;;  %v290_v4 = vld [vmem:[%s239_s30 + $0x40] sm:$0xff]  ;;  %v292_v5 = vld [vmem:[%s239_s30 + $0x50] sm:$0xff] }
  0x1b   : > { %287 = vst [vmem:[%s235_s7 + $0x10] sm:$0xff] %v286_v2  ;;  %v294_v6 = vld [vmem:[%s239_s30 + $0x60] sm:$0xff]  ;;  %v296_v7 = vld [vmem:[%s239_s30 + $0x70] sm:$0xff] }
  0x1c   : > { %289 = vst [vmem:[%s235_s7 + $0x18] sm:$0xff] %v288_v3 }
  0x1d   : > { %291 = vst [vmem:[%s235_s7 + $0x20] sm:$0xff] %v290_v4 }
  0x1e   : > { %293 = vst [vmem:[%s235_s7 + $0x28] sm:$0xff] %v292_v5 }
  0x1f   : > { %295 = vst [vmem:[%s235_s7 + $0x30] sm:$0xff] %v294_v6 }
  0x20   : > { %297 = vst [vmem:[%s235_s7 + $0x38] sm:$0xff] %v296_v7 }
  0x21 PF: > { %303 = sbr.rel (!%p1297_p5) target bundleno = 47 (0x2f), region = 66  ;;  %s305_s10 = sand.u32 (%p1297_p5), 1, %s1191_s22  }
  0x22   : > { %s1031_s11 = sshll.u32 (%p1297_p5), %s1207_s26, 4  ;;  %s1030_s12 = sshll.u32 (%p1297_p5), %s305_s10, 6 }
  0x23   : > { %s309_s14 = sadd.s32 (%p1297_p5), %s1203_s25, %s1031_s11  ;;  %s307_s19 = scalar_lea.vmem (%p1297_p5), [#allocation3], %s1030_s12 }
  0x24   : > { %s1032_s15 = sshll.u32 (%p1297_p5), %s309_s14, 3 }
  0x25   : > { %s311_s18 = scalar_lea.vmem (%p1297_p5), %s1495_s1, %s1032_s15 }
  0x26   : > { %v354_v8 = vld [vmem:[%s311_s18] sm:$0xff]  ;;  %v356_v9 = vld [vmem:[%s311_s18 + $0x10] sm:$0xff] }
  0x27   : > { %v358_v10 = vld [vmem:[%s311_s18 + $0x20] sm:$0xff]  ;;  %355 = vst [vmem:[%s307_s19] sm:$0xff] %v354_v8  ;;  %v360_v11 = vld [vmem:[%s311_s18 + $0x30] sm:$0xff] }
  0x28   : > { %357 = vst [vmem:[%s307_s19 + $0x8] sm:$0xff] %v356_v9  ;;  %v362_v12 = vld [vmem:[%s311_s18 + $0x40] sm:$0xff]  ;;  %v364_v13 = vld [vmem:[%s311_s18 + $0x50] sm:$0xff] }
  0x29   : > { %359 = vst [vmem:[%s307_s19 + $0x10] sm:$0xff] %v358_v10  ;;  %v366_v14 = vld [vmem:[%s311_s18 + $0x60] sm:$0xff]  ;;  %v368_v15 = vld [vmem:[%s311_s18 + $0x70] sm:$0xff] }
  0x2a   : > { %361 = vst [vmem:[%s307_s19 + $0x18] sm:$0xff] %v360_v11 }
  0x2b   : > { %363 = vst [vmem:[%s307_s19 + $0x20] sm:$0xff] %v362_v12 }
  0x2c   : > { %365 = vst [vmem:[%s307_s19 + $0x28] sm:$0xff] %v364_v13 }
  0x2d   : > { %367 = vst [vmem:[%s307_s19 + $0x30] sm:$0xff] %v366_v14 }
  0x2e   : > { %369 = vst [vmem:[%s307_s19 + $0x38] sm:$0xff] %v368_v15 }
  0x2f PF: > { %375 = sbr.rel (!%p1297_p5) target bundleno = 61 (0x3d), region = 104  ;;  %s377_s20 = sand.u32 (%p1297_p5), 1, %s1191_s22  }
  0x30   : > { %s1034_s30 = sshll.u32 (%p1297_p5), %s1207_s26, 4  ;;  %s1033_s7 = sshll.u32 (%p1297_p5), %s377_s20, 6 }
  0x31   : > { %s381_s10 = sadd.s32 (%p1297_p5), %s1203_s25, %s1034_s30  ;;  %s379_s16 = scalar_lea.vmem (%p1297_p5), [#allocation4], %s1033_s7 }
  0x32   : > { %s1035_s11 = sshll.u32 (%p1297_p5), %s381_s10, 3 }
  0x33   : > { %s383_s15 = scalar_lea.vmem (%p1297_p5), %s1496_s2, %s1035_s11 }
  0x34   : > { %v426_v16 = vld [vmem:[%s383_s15] sm:$0xff]  ;;  %v428_v17 = vld [vmem:[%s383_s15 + $0x10] sm:$0xff] }
  0x35   : > { %v430_v18 = vld [vmem:[%s383_s15 + $0x20] sm:$0xff]  ;;  %427 = vst [vmem:[%s379_s16] sm:$0xff] %v426_v16  ;;  %v432_v19 = vld [vmem:[%s383_s15 + $0x30] sm:$0xff] }
  0x36   : > { %429 = vst [vmem:[%s379_s16 + $0x8] sm:$0xff] %v428_v17  ;;  %v434_v20 = vld [vmem:[%s383_s15 + $0x40] sm:$0xff]  ;;  %v436_v21 = vld [vmem:[%s383_s15 + $0x50] sm:$0xff] }
  0x37   : > { %431 = vst [vmem:[%s379_s16 + $0x10] sm:$0xff] %v430_v18  ;;  %v438_v22 = vld [vmem:[%s383_s15 + $0x60] sm:$0xff]  ;;  %v440_v23 = vld [vmem:[%s383_s15 + $0x70] sm:$0xff] }
  0x38   : > { %433 = vst [vmem:[%s379_s16 + $0x18] sm:$0xff] %v432_v19 }
  0x39   : > { %435 = vst [vmem:[%s379_s16 + $0x20] sm:$0xff] %v434_v20 }
  0x3a   : > { %437 = vst [vmem:[%s379_s16 + $0x28] sm:$0xff] %v436_v21 }
  0x3b   : > { %439 = vst [vmem:[%s379_s16 + $0x30] sm:$0xff] %v438_v22 }
  0x3c   : > { %441 = vst [vmem:[%s379_s16 + $0x38] sm:$0xff] %v440_v23 }
  0x3d PF: > { %p1036_p9 = scmp.ge.s32.totalorder %s1211_s27, 1  ;;  %p454_p10 = scmp.lt.s32.totalorder %s1211_s27, 5 }
  0x3f   : > { %p455_p11 = pnand %p1036_p9, %p454_p10 }
  0x40   : > { %p516_p12 = scmp.lt.s32.totalorder (!%p455_p11), %s1199_s24, 1  ;;  %s461_s30 = sand.u32 (!%p455_p11), 1, %s1187_s21  }
  0x41   : > { %458 = sbr.rel (%p455_p11) target bundleno = 419 (0x1a3), region = 146  ;;  %s1356_s7 = sshll.u32 (!%p455_p11), %s461_s30, 6 }
  0x42   : > { %s1359_s10 = scalar_lea.vmem (!%p455_p11), [#allocation2], %s1356_s7  ;;  %s1363_s11 = scalar_lea.vmem (!%p455_p11), [#allocation3], %s1356_s7 }
  0x43   : > { %s1370_s21 = scalar_lea.vmem (!%p455_p11), [#allocation4], %s1356_s7  ;;  %s1448_s19 = scalar_lea.vmem (!%p455_p11), [#allocation5], %s1356_s7 }
  0x46   : > { %v1213_v24 = vmov 0   ;;  %s517_s8 = scalar_select %p516_p12, %s1199_s24, 1  ;;  %v1214_v25 = vmov 2   ;;  %v1215_v30 = vmov 1   ;;  %v536_v43 = vld [vmem:[%s1359_s10 + $0x38] sm:$0xff]  ;;  %v591_v44 = vld [vmem:[%s1363_s11 + $0x30] sm:$0xff] }
  0x47   : > { %1141 = vset.pattern.permute.xlu1 %v1213_v24  ;;  %1140 = vset.pattern.permute.xlu0 %v1213_v24  ;;  %v535_v45 = vld [vmem:[%s1359_s10 + $0x30] sm:$0xff]  ;;  %v590_v46 = vld [vmem:[%s1363_s11 + $0x28] sm:$0xff]  ;;  %v592_v47 = vld [vmem:[%s1363_s11 + $0x38] sm:$0xff]  ;;  %vm753_vm0 = vcmask 523264   ;;  %s1052_s7 = sshll.u32 (%p1303_p6), %s1199_s24, 4 }
  0x48   : > { %1143 = vset.pattern.permute.xlu2 %v1214_v25  ;;  %s1056_s17 = sshll.u32 %s517_s8, 6  ;;  %v648_v48 = vld [vmem:[%s1370_s21 + $0x38] sm:$0xff]  ;;  %v534_v52 = vld [vmem:[%s1359_s10 + $0x28] sm:$0xff]  ;;  %v647_v53 = vld [vmem:[%s1370_s21 + $0x30] sm:$0xff] }
  0x49   : > { %s1345_s20 = scalar_lea.vmem %s1497_s3, %s1056_s17  ;;  %v646_v0 = vld [vmem:[%s1370_s21 + $0x28] sm:$0xff]  ;;  %v705_v1 = vld [vmem:[%s1499_s5] sm:$0xff]  ;;  %v707_v12 = vld [vmem:[%s1499_s5 + $0x10] sm:$0xff] }
  0x4a   : > { %v528_v26 = vld [vmem:[%s1345_s20 + $0x38] sm:$0xff]  ;;  %v527_v27 = vld [vmem:[%s1345_s20 + $0x30] sm:$0xff]  ;;  %v525_v28 = vld [vmem:[%s1345_s20 + $0x20] sm:$0xff] }
  0x4b   : > { %574 = vperm.xlu0 %1140, %v528_v26   ;;  %569 = vperm.xlu1 %1141, %v527_v27   ;;  %v526_v29 = vld [vmem:[%s1345_s20 + $0x28] sm:$0xff]  ;;  %v524_v32 = vld [vmem:[%s1345_s20 + $0x18] sm:$0xff]  ;;  %v523_v33 = vld [vmem:[%s1345_s20 + $0x10] sm:$0xff] }
  0x4c   : > { %678 = vperm.xlu2 %1143, %v528_v26   ;;  %v522_v31 = vld [vmem:[%s1345_s20 + $0x8] sm:$0xff]  ;;  %v521_v34 = vld [vmem:[%s1345_s20] sm:$0xff] }
  0x4d   : > { %v533_v10 = vld [vmem:[%s1359_s10 + $0x20] sm:$0xff]  ;;  %v710_v22 = vld [vmem:[%s1499_s5 + $0x28] sm:$0xff] }
  0x4e   : > { %v589_v11 = vld [vmem:[%s1363_s11 + $0x20] sm:$0xff] }
  0x4f   : > { %v645_v15 = vld [vmem:[%s1370_s21 + $0x20] sm:$0xff] }
  0x53   : > { %1142 = vset.pattern.permute.xlu1 %v1215_v30  ;;  %559 = vperm.xlu0 %1140, %v525_v28  }
  0x54   : > { %618 = vperm.xlu1 %1142, %v527_v27   ;;  %1144 = vset.pattern.permute.xlu2 %v1213_v24 }
  0x55   : > { %564 = vperm.xlu2 %1144, %v526_v29  }
  0x5b   : > { %1146 = vset.pattern.permute.xlu0 %v1215_v30 }
  0x5c   : > { %614 = vperm.xlu1 %1142, %v526_v29   ;;  %622 = vperm.xlu0 %1146, %v528_v26   ;;  %v712_v26 = vld [vmem:[%s1499_s5 + $0x38] sm:$0xff] }
  0x5d   : > { %1145 = vset.pattern.permute.xlu2 %v1214_v25 }
  0x5e   : > { %674 = vperm.xlu2 %1145, %v527_v27  }
  0x64   : > { %610 = vperm.xlu1 %1142, %v525_v28   ;;  %598 = vperm.xlu0 %1146, %v522_v31  }
  0x66   : > { %670 = vperm.xlu2 %1145, %v526_v29  }
  0x6c   : > { %1147 = vset.pattern.permute.xlu1 %v1213_v24  ;;  %1151 = vset.pattern.permute.xlu0 %v1214_v25 }
  0x6d   : > { %554 = vperm.xlu1 %1147, %v524_v32   ;;  %666 = vperm.xlu0 %1151, %v525_v28  }
  0x6e   : > { %1148 = vset.pattern.permute.xlu2 %v1215_v30 }
  0x6f   : > { %606 = vperm.xlu2 %1148, %v524_v32  }
  0x75   : > { %549 = vperm.xlu1 %1147, %v523_v33   ;;  %650 = vperm.xlu0 %1151, %v521_v34  }
  0x77   : > { %602 = vperm.xlu2 %1148, %v523_v33  }
  0x7d   : > { %1149 = vset.pattern.permute.xlu1 %v1214_v25  ;;  %1156 = vset.pattern.permute.xlu0 %v1213_v24 }
  0x7e   : > { %662 = vperm.xlu1 %1149, %v524_v32  }
  0x7f   : > { %1150 = vset.pattern.permute.xlu2 %v1213_v24 }
  0x80   : > { %544 = vperm.xlu2 %1150, %v522_v31  }
  0x86   : > { %658 = vperm.xlu1 %1149, %v523_v33  }
  0x88   : > { %539 = vperm.xlu2 %1150, %v521_v34  }
  0x8e   : > { %1152 = vset.pattern.permute.xlu1 %v1215_v30  ;;  %v644_v30 = vld [vmem:[%s1370_s21 + $0x18] sm:$0xff] }
  0x8f   : > { %594 = vperm.xlu1 %1152, %v521_v34   ;;  %v586_v34 = vld [vmem:[%s1363_s11 + $0x8] sm:$0xff] }
  0x90   : > { %1153 = vset.pattern.permute.xlu2 %v1214_v25  ;;  %v532_v25 = vld [vmem:[%s1359_s10 + $0x18] sm:$0xff] }
  0x91   : > { %654 = vperm.xlu2 %1153, %v522_v31  }
  0x97   : > { %1154 = vset.pattern.permute.xlu1 %v1213_v24 }
  0x98   : > { %715 = vperm.xlu1 %1154, %v705_v1  }
  0x99   : > { %1155 = vset.pattern.permute.xlu2 %v1213_v24  ;;  %v588_v24 = vld [vmem:[%s1363_s11 + $0x18] sm:$0xff] }
  0xa0   : > { %725 = vperm.xlu1 %1154, %v707_v12  }
  0xa6   : > { %v679_v35 = vpop.permute.xlu2 %678 }
  0xa7   : > { %v688_v59 = vmul.f32 %v679_v35, %v648_v48  ;;  %v530_v35 = vld [vmem:[%s1359_s10 + $0x8] sm:$0xff] }
  0xa8   : > { %740 = vperm.xlu1 %1154, %v710_v22  }
  0xaf   : > { %v565_v36 = vpop.permute.xlu2 %564 }
  0xb0   : > { %v582_v60 = vmul.f32 %v565_v36, %v534_v52  ;;  %750 = vperm.xlu1 %1154, %v712_v26   ;;  %v531_v36 = vld [vmem:[%s1359_s10 + $0x10] sm:$0xff] }
  0xb8   : > { %v675_v37 = vpop.permute.xlu2 %674 }
  0xb9   : > { %v687_v61 = vmul.f32 %v675_v37, %v647_v53  ;;  %v708_v53 = vld [vmem:[%s1499_s5 + $0x18] sm:$0xff] }
  0xbd   : > { %v570_v38 = vpop.permute.xlu1 %569  ;;  %v575_v39 = vpop.permute.xlu0 %574 }
  0xbe   : > { %v584_v49 = vmul.f32 %v575_v39, %v536_v43  ;;  %v583_v56 = vmul.f32 %v570_v38, %v535_v45  ;;  %v709_v38 = vld [vmem:[%s1499_s5 + $0x20] sm:$0xff]  ;;  %v706_v39 = vld [vmem:[%s1499_s5 + $0x8] sm:$0xff] }
  0xbf   : > { %735 = vperm.xlu0 %1156, %v709_v38   ;;  %720 = vperm.xlu2 %1155, %v706_v39   ;;  %v642_v45 = vld [vmem:[%s1370_s21 + $0x8] sm:$0xff] }
  0xc0   : > { %v671_v40 = vpop.permute.xlu2 %670 }
  0xc1   : > { %v686_v4 = vmul.f32 %v671_v40, %v646_v0  ;;  %v587_v40 = vld [vmem:[%s1363_s11 + $0x10] sm:$0xff] }
  0xc5   : > { %v560_v41 = vpop.permute.xlu0 %559 }
  0xc6   : > { %v619_v42 = vpop.permute.xlu1 %618  ;;  %v581_v13 = vmul.f32 %v560_v41, %v533_v10  ;;  %v704_v10 = vld [vmem:[%s1498_s4 + $0x38] sm:$0xff] }
  0xc7   : > { %v631_v50 = vmul.f32 %v619_v42, %v591_v44  ;;  %730 = vperm.xlu2 %1155, %v708_v53  }
  0xc9   : > { %v607_v51 = vpop.permute.xlu2 %606  ;;  %v639_v62 = vadd.f32 %v631_v50, %v583_v56  ;;  %v529_v56 = vld [vmem:[%s1359_s10] sm:$0xff] }
  0xca   : > { %v628_v28 = vmul.f32 %v607_v51, %v588_v24 }
  0xcb   : > { %v695_v5 = vadd.f32 %v687_v61, %v639_v62  ;;  %v711_v61 = vld [vmem:[%s1499_s5 + $0x30] sm:$0xff] }
  0xce   : > { %v615_v54 = vpop.permute.xlu1 %614  ;;  %v623_v55 = vpop.permute.xlu0 %622 }
  0xcf   : > { %v630_v57 = vmul.f32 %v615_v54, %v590_v46  ;;  %v632_v58 = vmul.f32 %v623_v55, %v592_v47  ;;  %v643_v46 = vld [vmem:[%s1370_s21 + $0x10] sm:$0xff]  ;;  %745 = vperm.xlu2 %1155, %v711_v61  }
  0xd1   : > { %v640_v63 = vadd.f32 %v632_v58, %v584_v49  ;;  %v638_v2 = vadd.f32 %v630_v57, %v582_v60  ;;  %v603_v9 = vpop.permute.xlu2 %602  ;;  %v585_v57 = vld [vmem:[%s1363_s11] sm:$0xff] }
  0xd2   : > { %v627_v47 = vmul.f32 %v603_v9, %v587_v40  ;;  %v702_v9 = vld [vmem:[%s1498_s4 + $0x28] sm:$0xff] }
  0xd3   : > { %v696_v3 = vadd.f32 %v688_v59, %v640_v63  ;;  %v694_v8 = vadd.f32 %v686_v4, %v638_v2  ;;  %v641_v59 = vld [vmem:[%s1370_s21] sm:$0xff]  ;;  %v699_v4 = vld [vmem:[%s1498_s4 + $0x10] sm:$0xff]  ;;  %s835_s21 = sadd.s32 (%p1303_p6), %s1195_s23, %s1052_s7 }
  0xd4   : > { %s1053_s20 = sshll.u32 (%p1303_p6), %s835_s21, 3 }
  0xd5   : > { %786 = vmatpush.msra.mxu0 %v696_v3  ;;  %1057 = vmatpush.msra.mxu1 %v696_v3  ;;  %s837_s9 = scalar_lea.vmem (%p1303_p6), %s1500_s6, %s1053_s20 }
  0xd6   : > { %1058 = vmatpush.msra.mxu2 %v696_v3  ;;  %1059 = vmatpush.msra.mxu3 %v696_v3  ;;  %v611_v6 = vpop.permute.xlu1 %610  ;;  %v599_v7 = vpop.permute.xlu0 %598  ;;  %v697_v3 = vld [vmem:[%s1498_s4] sm:$0xff] }
  0xd7   : > { %787 = vmatpush.msra.mxu0 %v695_v5  ;;  %1060 = vmatpush.msra.mxu1 %v695_v5  ;;  %v629_v14 = vmul.f32 %v611_v6, %v589_v11  ;;  %v626_v41 = vmul.f32 %v599_v7, %v586_v34  ;;  %v703_v6 = vld [vmem:[%s1498_s4 + $0x30] sm:$0xff]  ;;  %v698_v7 = vld [vmem:[%s1498_s4 + $0x8] sm:$0xff] }
  0xd8   : > { %1061 = vmatpush.msra.mxu2 %v695_v5  ;;  %1062 = vmatpush.msra.mxu3 %v695_v5  ;;  %v701_v5 = vld [vmem:[%s1498_s4 + $0x20] sm:$0xff] }
  0xd9   : > { %788 = vmatpush.msra.mxu0 %v694_v8  ;;  %1063 = vmatpush.msra.mxu1 %v694_v8  ;;  %v637_v18 = vadd.f32 %v629_v14, %v581_v13 }
  0xda   : > { %1064 = vmatpush.msra.mxu2 %v694_v8  ;;  %1065 = vmatpush.msra.mxu3 %v694_v8  ;;  %v545_v20 = vpop.permute.xlu2 %544  ;;  %v700_v8 = vld [vmem:[%s1498_s4 + $0x18] sm:$0xff] }
  0xdb   : > { %v578_v42 = vmul.f32 %v545_v20, %v530_v35 }
  0xdd   : > { %v634_v49 = vadd.f32 %v626_v41, %v578_v42 }
  0xdf   : > { %v555_v16 = vpop.permute.xlu1 %554  ;;  %v667_v17 = vpop.permute.xlu0 %666 }
  0xe0   : > { %v685_v19 = vmul.f32 %v667_v17, %v645_v15  ;;  %v580_v29 = vmul.f32 %v555_v16, %v532_v25 }
  0xe2   : > { %v693_v21 = vadd.f32 %v685_v19, %v637_v18  ;;  %v540_v27 = vpop.permute.xlu2 %539  ;;  %v636_v32 = vadd.f32 %v628_v28, %v580_v29 }
  0xe3   : > { %v577_v62 = vmul.f32 %v540_v27, %v529_v56 }
  0xe4   : > { %789 = vmatpush.msra.mxu0 %v693_v21  ;;  %1066 = vmatpush.msra.mxu1 %v693_v21 }
  0xe5   : > { %1067 = vmatpush.msra.mxu2 %v693_v21  ;;  %1068 = vmatpush.msra.mxu3 %v693_v21 }
  0xe7   : > { %v550_v23 = vpop.permute.xlu1 %549  ;;  %v651_v58 = vpop.permute.xlu0 %650 }
  0xe8   : > { %v579_v43 = vmul.f32 %v550_v23, %v531_v36  ;;  %v681_v0 = vmul.f32 %v651_v58, %v641_v59 }
  0xea   : > { %v635_v50 = vadd.f32 %v627_v47, %v579_v43 }
  0xeb   : > { %v655_v44 = vpop.permute.xlu2 %654 }
  0xec   : > { %v682_v51 = vmul.f32 %v655_v44, %v642_v45 }
  0xee   : > { %v690_v55 = vadd.f32 %v682_v51, %v634_v49 }
  0xf0   : > { %v663_v31 = vpop.permute.xlu1 %662 }
  0xf1   : > { %v684_v33 = vmul.f32 %v663_v31, %v644_v30 }
  0xf3   : > { %v692_v37 = vadd.f32 %v684_v33, %v636_v32 }
  0xf5   : > { %790 = vmatpush.msra.mxu0 %v692_v37  ;;  %1069 = vmatpush.msra.mxu1 %v692_v37 }
  0xf6   : > { %1070 = vmatpush.msra.mxu2 %v692_v37  ;;  %1071 = vmatpush.msra.mxu3 %v692_v37 }
  0xf8   : > { %v659_v48 = vpop.permute.xlu1 %658 }
  0xf9   : > { %v683_v52 = vmul.f32 %v659_v48, %v643_v46 }
  0xfb   : > { %v691_v54 = vadd.f32 %v683_v52, %v635_v50 }
  0xfd   : > { %791 = vmatpush.msra.mxu0 %v691_v54  ;;  %1072 = vmatpush.msra.mxu1 %v691_v54 }
  0xfe   : > { %1073 = vmatpush.msra.mxu2 %v691_v54  ;;  %1074 = vmatpush.msra.mxu3 %v691_v54 }
  0xff   : > { %792 = vmatpush.msra.mxu0 %v690_v55  ;;  %1075 = vmatpush.msra.mxu1 %v690_v55 }
 0x100   : > { %1076 = vmatpush.msra.mxu2 %v690_v55  ;;  %1077 = vmatpush.msra.mxu3 %v690_v55 }
 0x101   : > { %v595_v60 = vpop.permute.xlu1 %594 }
 0x102   : > { %v625_v63 = vmul.f32 %v595_v60, %v585_v57 }
 0x104   : > { %v633_v1 = vadd.f32 %v625_v63, %v577_v62 }
 0x106   : > { %v689_v2 = vadd.f32 %v681_v0, %v633_v1 }
 0x108   : > { %793 = vmatpush.msra.mxu0 %v689_v2  ;;  %1078 = vmatpush.msra.mxu1 %v689_v2 }
 0x109   : > { %1079 = vmatpush.msra.mxu2 %v689_v2  ;;  %1080 = vmatpush.msra.mxu3 %v689_v2 }
 0x10a   : > { %1043 = vmatmul.msk.f32.vlgmr.msra.gmra.mxu0 %vm753_vm0, %v697_v3  ;;  %1045 = vmatmul.msk.f32.vlgmr.msra.gmra.mxu1 %vm753_vm0, %v699_v4  ;;  %v716_v11 = vpop.permute.xlu1 %715 }
 0x10b   : > { %1047 = vmatmul.msk.f32.vlgmr.msra.gmra.mxu2 %vm753_vm0, %v701_v5  ;;  %1049 = vmatmul.msk.f32.vlgmr.msra.gmra.mxu3 %vm753_vm0, %v703_v6 }
 0x112   : > { %1044 = vmatmul.msk.f32.gmra.mxu0 %vm753_vm0, %v698_v7  ;;  %1046 = vmatmul.msk.f32.gmra.mxu1 %vm753_vm0, %v700_v8  ;;  %v726_v13 = vpop.permute.xlu1 %725 }
 0x113   : > { %1048 = vmatmul.msk.f32.gmra.mxu2 %vm753_vm0, %v702_v9  ;;  %1050 = vmatmul.msk.f32.gmra.mxu3 %vm753_vm0, %v704_v10 }
 0x119   : > { %v721_v12 = vpop.permute.xlu2 %720 }
 0x11a   : > { %v741_v19 = vpop.permute.xlu1 %740 }
 0x121   : > { %v731_v14 = vpop.permute.xlu2 %730 }
 0x122   : > { %v751_v30 = vpop.permute.xlu1 %750 }
 0x129   : > { %v746_v21 = vpop.permute.xlu2 %745 }
 0x131   : > { %v736_v20 = vpop.permute.xlu0 %735 }
 0x187   : > { %v795_v15 = vpop.f32.mrf.mxu0  ;;  %v801_v16 = vpop.f32.mrf.mxu1 }
 0x188   : > { %v796_v17 = vadd.f32 %v795_v15, %v716_v11  ;;  %v802_v18 = vadd.f32 %v801_v16, %v726_v13 }
 0x18a   : > { %819 = vst [vmem:[%s1448_s19] sm:$0xff] %v796_v17 }
 0x18b   : > { %821 = vst [vmem:[%s1448_s19 + $0x10] sm:$0xff] %v802_v18 }
 0x18e   : > { %v807_v22 = vpop.f32.mrf.mxu2  ;;  %v813_v23 = vpop.f32.mrf.mxu3 }
 0x18f   : > { %v808_v24 = vadd.f32 %v807_v22, %v736_v20  ;;  %v814_v25 = vadd.f32 %v813_v23, %v746_v21  ;;  %v798_v26 = vpop.f32.mrf.mxu0  ;;  %v804_v27 = vpop.f32.mrf.mxu1 }
 0x190   : > { %v799_v28 = vadd.f32 %v798_v26, %v721_v12  ;;  %v805_v29 = vadd.f32 %v804_v27, %v731_v14 }
 0x191   : > { %823 = vst [vmem:[%s1448_s19 + $0x20] sm:$0xff] %v808_v24  ;;  %v880_v35 = vld [vmem:[%s1448_s19] sm:$0xff] (%p1303_p6) }
 0x192   : > { %825 = vst [vmem:[%s1448_s19 + $0x30] sm:$0xff] %v814_v25  ;;  %v884_v37 = vld [vmem:[%s1448_s19 + $0x10] sm:$0xff] (%p1303_p6) }
 0x193   : > { %820 = vst [vmem:[%s1448_s19 + $0x8] sm:$0xff] %v799_v28 }
 0x194   : > { %822 = vst [vmem:[%s1448_s19 + $0x18] sm:$0xff] %v805_v29 }
 0x195   : > { %881 = vst [vmem:[%s837_s9] sm:$0xff] (%p1303_p6), %v880_v35 }
 0x196   : > { %v810_v31 = vpop.f32.mrf.mxu2  ;;  %v816_v32 = vpop.f32.mrf.mxu3  ;;  %833 = sbr.rel (!%p1303_p6) target bundleno = 419 (0x1a3), region = 162  ;;  %885 = vst [vmem:[%s837_s9 + $0x20] sm:$0xff] (%p1303_p6), %v884_v37 }
 0x197   : > { %v811_v33 = vadd.f32 %v810_v31, %v741_v19  ;;  %v817_v34 = vadd.f32 %v816_v32, %v751_v30 }
 0x198   : > { %v888_v39 = vld [vmem:[%s1448_s19 + $0x20] sm:$0xff] (%p1303_p6) }
 0x199   : > { %824 = vst [vmem:[%s1448_s19 + $0x28] sm:$0xff] %v811_v33  ;;  %v892_v41 = vld [vmem:[%s1448_s19 + $0x30] sm:$0xff] (%p1303_p6) }
 0x19a   : > { %826 = vst [vmem:[%s1448_s19 + $0x38] sm:$0xff] %v817_v34  ;;  %v882_v36 = vld [vmem:[%s1448_s19 + $0x8] sm:$0xff] (%p1303_p6) }
 0x19b   : > { %v886_v38 = vld [vmem:[%s1448_s19 + $0x18] sm:$0xff]  ;;  %883 = vst [vmem:[%s837_s9 + $0x10] sm:$0xff] %v882_v36 }
 0x19c   : > { %887 = vst [vmem:[%s837_s9 + $0x30] sm:$0xff] %v886_v38 }
 0x19d   : > { %889 = vst [vmem:[%s837_s9 + $0x40] sm:$0xff] %v888_v39 }
 0x19e   : > { %893 = vst [vmem:[%s837_s9 + $0x60] sm:$0xff] %v892_v41 }
 0x1a0   : > { %v890_v40 = vld [vmem:[%s1448_s19 + $0x28] sm:$0xff] }
 0x1a1   : > { %v894_v42 = vld [vmem:[%s1448_s19 + $0x38] sm:$0xff]  ;;  %891 = vst [vmem:[%s837_s9 + $0x50] sm:$0xff] %v890_v40 }
 0x1a2   : > { %895 = vst [vmem:[%s837_s9 + $0x70] sm:$0xff] %v894_v42 }
 0x1a3 PF: > { %s16_s27 = sadd.s32 1, %s1211_s27   ;;  %s1503_s21 = smov %s1191_s22 }
 0x1a4   : > { %p13_p13 = scmp.ge.s32.totalorder %s16_s27, 6   ;;  %s1504_s22 = smov %s1311_s13 }
 0x1a5   : > { %s1505_s23 = smov %s1203_s25  ;;  %s1506_s24 = smov %s1207_s26 }
 0x1a6   : > { %s1507_s25 = smov %s1510_s28  ;;  %s1508_s26 = smov %s1514_s29 }
 0x1a7   :  { %15 = sbr.rel (!%p13_p13) target bundleno = 4 (0x4), region = 250 }

</bundles_post_ra>
